<compile_context>
chip_gen: v6e
topology: v6e:2x2x1
jax: 0.10.0
libtpu: 0.0.40
codegen_flags: <defaults>
</compile_context>

<pallas_src>
import functools

import jax
import jax.numpy as jnp
from jax.experimental import pallas as pl
from jax.experimental.pallas import tpu as pltpu


def _cdiv(a, b):
    return (a + b - 1) // b


def _round_up(a, b):
    return _cdiv(a, b) * b


def _focal_loss_kernel(alpha_ref, logits_ref, targets_ref, out_ref, acc_ref, *,
                       gamma, size_average, n_true, num_classes):
    j = pl.program_id(0)

    @pl.when(j == 0)
    def _init():
        acc_ref[...] = jnp.zeros_like(acc_ref)

    t = targets_ref[...]                         # (tile_rows, 128) int32
    tile_rows = t.shape[0]

    # ---- running max over classes (elementwise across per-class vreg slabs) ----
    m = logits_ref[0].astype(jnp.float32)
    for cc in range(1, num_classes):
        m = jnp.maximum(m, logits_ref[cc].astype(jnp.float32))

    # ---- single pass over classes: exp-sum + one-hot gathers of z / exp(z) / alpha ----
    s = None      # sum_c exp(z_c)
    z_t = None    # z at the target class
    e_t = None    # exp(z) at the target class
    a_t = None    # alpha at the target class
    for cc in range(num_classes):
        z_c = logits_ref[cc].astype(jnp.float32) - m
        e_c = jnp.exp(z_c)
        mask_c = (t == cc).astype(jnp.float32)
        s = e_c if s is None else s + e_c
        z_sel = z_c * mask_c
        e_sel = e_c * mask_c
        a_sel = mask_c * alpha_ref[cc]           # scalar read from SMEM, broadcast
        z_t = z_sel if z_t is None else z_t + z_sel
        e_t = e_sel if e_t is None else e_t + e_sel
        a_t = a_sel if a_t is None else a_t + a_sel

    log_p = z_t - jnp.log(s)                     # log softmax at the target class
    probs = e_t * pl.reciprocal(s)               # reuse exp(z); full-precision recip

    one_minus = 1.0 - probs
    g = float(gamma)
    if g == 2.0:
        focal = one_minus * one_minus
    elif g == 1.0:
        focal = one_minus
    else:
        focal = jnp.power(one_minus, jnp.float32(g))
    loss = -a_t * focal * log_p                  # (tile_rows, 128)

    # ---- mask batch padding (samples beyond the true N) ----
    base = j * (tile_rows * 128)
    row = jax.lax.broadcasted_iota(jnp.int32, (tile_rows, 128), 0)
    col = jax.lax.broadcasted_iota(jnp.int32, (tile_rows, 128), 1)
    valid = ((base + row * 128 + col) < n_true).astype(jnp.float32)
    loss = loss * valid

    # ---- fold into the vreg-sized (8, 128) accumulator: tree of aligned row-group adds ----
    groups = [loss[i * 8:(i + 1) * 8, :] for i in range(tile_rows // 8)]
    while len(groups) > 1:
        nxt = [groups[i] + groups[i + 1] for i in range(0, len(groups) - 1, 2)]
        if len(groups) % 2:
            nxt.append(groups[-1])
        groups = nxt
    acc_ref[...] += groups[0]

    @pl.when(j == pl.num_programs(0) - 1)
    def _finalize():
        total = jnp.sum(acc_ref[...], axis=1, keepdims=True)   # (8, 1)  cross-lane
        total = jnp.sum(total, axis=0, keepdims=True)          # (1, 1)  cross-sublane
        if size_average:
            total = total * (1.0 / float(n_true))
        out_ref[...] = jnp.broadcast_to(total, out_ref.shape)  # lane-dense (8, 128) block


def focal_loss(logits, targets, alpha=None, gamma=2, size_average=True, tile_rows=None):
    """JAX/Pallas equivalent of FocalLoss.forward.

    logits:  (N, C) float array (any float dtype; cast to f32 inside the kernel)
    targets: (N,)   int array of class indices
    alpha:   (C,) / (C, 1) float array; defaults to ones (matches the module)
    Returns a scalar float32 loss.
    """
    logits = jnp.asarray(logits)
    n, c = logits.shape
    if alpha is None:
        alpha_vec = jnp.ones((c,), dtype=jnp.float32)
    else:
        alpha_vec = jnp.asarray(alpha, dtype=jnp.float32).reshape(-1)
    targets = jnp.asarray(targets, dtype=jnp.int32)

    # ---- generation-aware VMEM budget (v5e/v6e: 128 MiB phys -> 64 MiB; v7x: 64 -> 32) ----
    try:
        vmem_cap = int(pltpu.get_tpu_info().vmem_capacity_bytes)
    except Exception:
        vmem_cap = 64 * 1024 * 1024
    vmem_limit = int(min(max(vmem_cap // 2, 16 << 20), 64 << 20))

    itemsize = jnp.dtype(logits.dtype).itemsize
    rows_needed = max(1, _cdiv(n, 128))

    # ---- tile sizing: rows of 128 samples, multiple of 8 (dense (8,128) vregs) ----
    if tile_rows is None:
        # Working-set estimate per row-of-128 samples: double-buffered logits + int32
        # targets blocks plus ~10 live f32 compiler temporaries for the elementwise chain.
        ws_per_row = 2 * 128 * (c * itemsize + 4) + 10 * 128 * 4
        tile_rows = int(vmem_limit * 0.6) // ws_per_row
        tile_rows = max(8, (min(tile_rows, 6144) // 8) * 8)
    else:
        tile_rows = max(8, (int(tile_rows) // 8) * 8)
    tile_rows = min(tile_rows, _round_up(rows_needed, 8))

    num_tiles = _cdiv(rows_needed, tile_rows)
    padded_rows = num_tiles * tile_rows
    padded_n = padded_rows * 128

    # ---- layout plumbing (free reshapes: last dim stays contiguous) ----
    logits_t = jnp.transpose(logits)                                  # (C, N), native dtype
    logits_t = jnp.pad(logits_t, ((0, 0), (0, padded_n - n)))
    logits_3d = logits_t.reshape(c, padded_rows, 128)                 # classes on leading axis

    targets_p = jnp.pad(targets, (0, padded_n - n))
    targets_2d = targets_p.reshape(padded_rows, 128)

    kernel = functools.partial(
        _focal_loss_kernel, gamma=float(gamma), size_average=bool(size_average),
        n_true=int(n), num_classes=int(c))

    out = pl.pallas_call(
        kernel,
        out_shape=jax.ShapeDtypeStruct((8, 128), jnp.float32),
        grid_spec=pltpu.PrefetchScalarGridSpec(
            num_scalar_prefetch=0,
            grid=(num_tiles,),
            in_specs=[
                pl.BlockSpec(memory_space=pltpu.MemorySpace.SMEM),        # alpha (C,) scalars
                pl.BlockSpec((c, tile_rows, 128), lambda j: (0, j, 0)),   # logits slabs
                pl.BlockSpec((tile_rows, 128), lambda j: (j, 0)),         # targets
            ],
            out_specs=pl.BlockSpec((8, 128), lambda j: (0, 0)),
            scratch_shapes=[pltpu.VMEM((8, 128), jnp.float32)],
        ),
        compiler_params=pltpu.CompilerParams(
            dimension_semantics=("arbitrary",),
            vmem_limit_bytes=vmem_limit,
        ),
    )(alpha_vec, logits_3d, targets_2d)

    return out[0, 0]


def _reference_focal_loss(logits, targets, alpha=None, gamma=2, size_average=True):
    n, c = logits.shape
    if alpha is None:
        alpha = jnp.ones((c,), dtype=jnp.float32)
    p = jax.nn.softmax(logits.astype(jnp.float32), axis=1)
    probs = p[jnp.arange(n), targets].reshape(-1, 1)
    alpha_t = jnp.asarray(alpha, jnp.float32).reshape(-1)[targets].reshape(-1, 1)
    batch_loss = -alpha_t * jnp.power(1.0 - probs, gamma) * jnp.log(probs)
    return jnp.mean(batch_loss) if size_average else jnp.sum(batch_loss)


if __name__ == "__main__":
    key = jax.random.PRNGKey(0)
    k1, k2, k3, k4 = jax.random.split(key, 4)

    # Small case matching the module default (class_num=2).
    N, C = 8, 2
    logits = jax.random.normal(k1, (N, C), dtype=jnp.float32)
    targets = jax.random.randint(k2, (N,), 0, C, dtype=jnp.int32)

    loss = jax.block_until_ready(focal_loss(logits, targets, gamma=2, size_average=True))
    ref = _reference_focal_loss(logits, targets, gamma=2, size_average=True)
    assert jnp.allclose(loss, ref, atol=1e-5, rtol=1e-5), (loss, ref)

    loss_sum = jax.block_until_ready(
        focal_loss(logits, targets, gamma=2, size_average=False))
    ref_sum = _reference_focal_loss(logits, targets, gamma=2, size_average=False)
    assert jnp.allclose(loss_sum, ref_sum, atol=1e-5, rtol=1e-5), (loss_sum, ref_sum)

    # Multi-tile / padded-batch / non-uniform-alpha check: tile_rows forced small so the
    # grid loop, (8,128) accumulator and padding mask are all exercised (3000 -> 3 tiles).
    N2, C2 = 3000, 4
    logits2 = jax.random.normal(k3, (N2, C2), dtype=jnp.float32)
    targets2 = jax.random.randint(k4, (N2,), 0, C2, dtype=jnp.int32)
    alpha2 = jnp.array([0.25, 0.75, 1.0, 0.5], dtype=jnp.float32)
    loss2 = jax.block_until_ready(
        focal_loss(logits2, targets2, alpha=alpha2, gamma=2, size_average=True,
                   tile_rows=8))
    ref2 = _reference_focal_loss(logits2, targets2, alpha=alpha2, gamma=2,
                                 size_average=True)
    assert jnp.allclose(loss2, ref2, atol=1e-5, rtol=1e-4), (loss2, ref2)

    print("KERNEL_OK")
</pallas_src>

<mosaic_0001>
module attributes {stable_mosaic.version = 11 : i64} {
  func.func @_focal_loss_kernel(%arg0: i32, %arg1: memref<2xf32, #tpu.memory_space<smem>>, %arg2: memref<2x8x128xf32, #tpu.memory_space<vmem>>, %arg3: memref<8x128xi32, #tpu.memory_space<vmem>>, %arg4: memref<8x128xf32, #tpu.memory_space<vmem>>, %arg5: memref<8x128xf32, #tpu.memory_space<vmem>>) attributes {dimension_semantics = [#tpu.dimension_semantics<arbitrary>], iteration_bounds = array<i64: 1>, scalar_prefetch = 0 : i64, scratch_operands = 1 : i64, tpu.core_type = #tpu.core_type<tc>, window_params = [{transform_indices = @transform_0, window_bounds = array<i64: 2>}, {transform_indices = @transform_1, window_bounds = array<i64: 2, 8, 128>}, {transform_indices = @transform_2, window_bounds = array<i64: 8, 128>}, {pipeline_mode = #tpu.pipeline_mode<synchronous>, transform_indices = @transform_3, window_bounds = array<i64: 8, 128>}]} {
    %c0_i32 = arith.constant 0 : i32
    %0 = arith.cmpi eq, %arg0, %c0_i32 : i32
    %1 = arith.extui %0 : i1 to i32
    %c0_i32_0 = arith.constant 0 : i32
    %2 = arith.cmpi ne, %1, %c0_i32_0 : i32
    scf.if %2 {
      %cst_23 = arith.constant 0.000000e+00 : f32
      %69 = vector.broadcast %cst_23 : f32 to vector<8x128xf32>
      %c0_24 = arith.constant 0 : index
      %c0_25 = arith.constant 0 : index
      %70 = vector.load %arg5[%c0_24, %c0_25] : memref<8x128xf32, #tpu.memory_space<vmem>>, vector<8x128xf32>
      tpu.vector_store %arg5[%c0_24, %c0_25], %69 {strides = array<i32>} : memref<8x128xf32, #tpu.memory_space<vmem>>, vector<8x128xf32>,
    } else {
    }
    %c0 = arith.constant 0 : index
    %c0_1 = arith.constant 0 : index
    %3 = vector.load %arg3[%c0, %c0_1] : memref<8x128xi32, #tpu.memory_space<vmem>>, vector<8x128xi32>
    %c0_2 = arith.constant 0 : index
    %c0_3 = arith.constant 0 : index
    %c0_4 = arith.constant 0 : index
    %4 = vector.load %arg2[%c0_2, %c0_3, %c0_4] : memref<2x8x128xf32, #tpu.memory_space<vmem>>, vector<1x8x128xf32>
    %5 = vector.shape_cast %4 : vector<1x8x128xf32> to vector<8x128xf32>
    %c1 = arith.constant 1 : index
    %c0_5 = arith.constant 0 : index
    %c0_6 = arith.constant 0 : index
    %6 = vector.load %arg2[%c1, %c0_5, %c0_6] : memref<2x8x128xf32, #tpu.memory_space<vmem>>, vector<1x8x128xf32>
    %7 = vector.shape_cast %6 : vector<1x8x128xf32> to vector<8x128xf32>
    %8 = arith.maximumf %5, %7 : vector<8x128xf32>
    %c0_7 = arith.constant 0 : index
    %c0_8 = arith.constant 0 : index
    %c0_9 = arith.constant 0 : index
    %9 = vector.load %arg2[%c0_7, %c0_8, %c0_9] : memref<2x8x128xf32, #tpu.memory_space<vmem>>, vector<1x8x128xf32>
    %10 = vector.shape_cast %9 : vector<1x8x128xf32> to vector<8x128xf32>
    %11 = arith.subf %10, %8 : vector<8x128xf32>
    %12 = math.exp %11 : vector<8x128xf32>
    %c0_i32_10 = arith.constant 0 : i32
    %13 = vector.broadcast %c0_i32_10 : i32 to vector<8x128xi32>
    %14 = arith.cmpi eq, %3, %13 : vector<8x128xi32>
    %15 = arith.extui %14 : vector<8x128xi1> to vector<8x128xi32>
    %16 = arith.sitofp %15 : vector<8x128xi32> to vector<8x128xf32>
    %17 = arith.mulf %11, %16 : vector<8x128xf32>
    %18 = arith.mulf %12, %16 : vector<8x128xf32>
    %c0_11 = arith.constant 0 : index
    %19 = memref.load %arg1[%c0_11] : memref<2xf32, #tpu.memory_space<smem>>
    %20 = vector.broadcast %19 : f32 to vector<8x128xf32>
    %21 = arith.mulf %16, %20 : vector<8x128xf32>
    %c1_12 = arith.constant 1 : index
    %c0_13 = arith.constant 0 : index
    %c0_14 = arith.constant 0 : index
    %22 = vector.load %arg2[%c1_12, %c0_13, %c0_14] : memref<2x8x128xf32, #tpu.memory_space<vmem>>, vector<1x8x128xf32>
    %23 = vector.shape_cast %22 : vector<1x8x128xf32> to vector<8x128xf32>
    %24 = arith.subf %23, %8 : vector<8x128xf32>
    %25 = math.exp %24 : vector<8x128xf32>
    %c1_i32 = arith.constant 1 : i32
    %26 = vector.broadcast %c1_i32 : i32 to vector<8x128xi32>
    %27 = arith.cmpi eq, %3, %26 : vector<8x128xi32>
    %28 = arith.extui %27 : vector<8x128xi1> to vector<8x128xi32>
    %29 = arith.sitofp %28 : vector<8x128xi32> to vector<8x128xf32>
    %30 = arith.addf %12, %25 : vector<8x128xf32>
    %31 = arith.mulf %24, %29 : vector<8x128xf32>
    %32 = arith.mulf %25, %29 : vector<8x128xf32>
    %c1_15 = arith.constant 1 : index
    %33 = memref.load %arg1[%c1_15] : memref<2xf32, #tpu.memory_space<smem>>
    %34 = vector.broadcast %33 : f32 to vector<8x128xf32>
    %35 = arith.mulf %29, %34 : vector<8x128xf32>
    %36 = arith.addf %17, %31 : vector<8x128xf32>
    %37 = arith.addf %18, %32 : vector<8x128xf32>
    %38 = arith.addf %21, %35 : vector<8x128xf32>
    %39 = math.log %30 : vector<8x128xf32>
    %40 = arith.subf %36, %39 : vector<8x128xf32>
    %41 = tpu.reciprocal %30 : vector<8x128xf32> -> vector<8x128xf32>
    %42 = arith.mulf %37, %41 : vector<8x128xf32>
    %cst = arith.constant 1.000000e+00 : f32
    %43 = vector.broadcast %cst : f32 to vector<8x128xf32>
    %44 = arith.subf %43, %42 : vector<8x128xf32>
    %45 = arith.mulf %44, %44 : vector<8x128xf32>
    %cst_16 = arith.constant 0.000000e+00 : f32
    %46 = vector.broadcast %cst_16 : f32 to vector<8x128xf32>
    %47 = arith.subf %46, %38 : vector<8x128xf32>
    %48 = arith.mulf %47, %45 : vector<8x128xf32>
    %49 = arith.mulf %48, %40 : vector<8x128xf32>
    %c1024_i32 = arith.constant 1024 : i32
    %50 = arith.muli %arg0, %c1024_i32 : i32
    %51 = tpu.iota {dimensions = array<i32: 0>} : vector<8x128xi32>
    %52 = tpu.iota {dimensions = array<i32: 1>} : vector<8x128xi32>
    %c128_i32 = arith.constant 128 : i32
    %53 = vector.broadcast %c128_i32 : i32 to vector<8x128xi32>
    %54 = arith.muli %51, %53 : vector<8x128xi32>
    %55 = vector.broadcast %50 : i32 to vector<8x128xi32>
    %56 = arith.addi %55, %54 : vector<8x128xi32>
    %57 = arith.addi %56, %52 : vector<8x128xi32>
    %c8_i32 = arith.constant 8 : i32
    %58 = vector.broadcast %c8_i32 : i32 to vector<8x128xi32>
    %59 = arith.cmpi slt, %57, %58 : vector<8x128xi32>
    %60 = arith.extui %59 : vector<8x128xi1> to vector<8x128xi32>
    %61 = arith.sitofp %60 : vector<8x128xi32> to vector<8x128xf32>
    %62 = arith.mulf %49, %61 : vector<8x128xf32>
    %c0_17 = arith.constant 0 : index
    %c0_18 = arith.constant 0 : index
    %63 = vector.load %arg5[%c0_17, %c0_18] : memref<8x128xf32, #tpu.memory_space<vmem>>, vector<8x128xf32>
    %64 = arith.addf %63, %62 : vector<8x128xf32>
    %c0_19 = arith.constant 0 : index
    %c0_20 = arith.constant 0 : index
    %65 = vector.load %arg5[%c0_19, %c0_20] : memref<8x128xf32, #tpu.memory_space<vmem>>, vector<8x128xf32>
    tpu.vector_store %arg5[%c0_19, %c0_20], %64 {strides = array<i32>} : memref<8x128xf32, #tpu.memory_space<vmem>>, vector<8x128xf32>,
    %c0_i32_21 = arith.constant 0 : i32
    %66 = arith.cmpi eq, %arg0, %c0_i32_21 : i32
    %67 = arith.extui %66 : i1 to i32
    %c0_i32_22 = arith.constant 0 : i32
    %68 = arith.cmpi ne, %67, %c0_i32_22 : i32
    scf.if %68 {
      %c0_23 = arith.constant 0 : index
      %c0_24 = arith.constant 0 : index
      %69 = vector.load %arg5[%c0_23, %c0_24] : memref<8x128xf32, #tpu.memory_space<vmem>>, vector<8x128xf32>
      %cst_25 = arith.constant dense<0.000000e+00> : vector<8xf32>
      %70 = vector.multi_reduction <add>, %69, %cst_25 [1] : vector<8x128xf32> to vector<8xf32>
      %71 = vector.shape_cast %70 : vector<8xf32> to vector<8x1xf32>
      %cst_26 = arith.constant dense<0.000000e+00> : vector<1xf32>
      %72 = vector.multi_reduction <add>, %71, %cst_26 [0] : vector<8x1xf32> to vector<1xf32>
      %73 = vector.shape_cast %72 : vector<1xf32> to vector<1x1xf32>
      %cst_27 = arith.constant 1.250000e-01 : f32
      %74 = vector.broadcast %cst_27 : f32 to vector<1x1xf32>
      %75 = arith.mulf %73, %74 : vector<1x1xf32>
      %76 = vector.shape_cast %75 : vector<1x1xf32> to vector<1x1xf32>
      %77 = vector.broadcast %76 : vector<1x1xf32> to vector<8x128xf32>
      %c0_28 = arith.constant 0 : index
      %c0_29 = arith.constant 0 : index
      %78 = vector.load %arg4[%c0_28, %c0_29] : memref<8x128xf32, #tpu.memory_space<vmem>>, vector<8x128xf32>
      tpu.vector_store %arg4[%c0_28, %c0_29], %77 {strides = array<i32>} : memref<8x128xf32, #tpu.memory_space<vmem>>, vector<8x128xf32>,
    } else {
    }
    return
  }
  func.func @transform_0(%arg0: i32) -> i32 {
    %c0_i32 = arith.constant 0 : i32
    %c0_i32_0 = arith.constant 0 : i32
    return %c0_i32 : i32
  }
  func.func @transform_1(%arg0: i32) -> (i32, i32, i32) {
    %c0_i32 = arith.constant 0 : i32
    %c0_i32_0 = arith.constant 0 : i32
    %c0_i32_1 = arith.constant 0 : i32
    return %c0_i32, %arg0, %c0_i32_0 : i32, i32, i32
  }
  func.func @transform_2(%arg0: i32) -> (i32, i32) {
    %c0_i32 = arith.constant 0 : i32
    %c0_i32_0 = arith.constant 0 : i32
    return %arg0, %c0_i32 : i32, i32
  }
  func.func @transform_3(%arg0: i32) -> (i32, i32) {
    %c0_i32 = arith.constant 0 : i32
    %c0_i32_0 = arith.constant 0 : i32
    %c0_i32_1 = arith.constant 0 : i32
    return %c0_i32, %c0_i32_0 : i32, i32
  }
}

</mosaic_0001>

<bundles_post_ra>
// kernel: tpu_custom_call.1
= control target key start
LH: loop header
LB: loop body
LE: loop exit
PB: predicated region body
PF: predicated region fallthrough
CT: control target
= control target key end

     0   :  { %8 = vsyncpa [#allocation6], 0  ;;  %s279_s0 = inlined_call_operand.hbm [shape: f32[2], index: 0, kind: input, shape index: {}]   ;;  %s280_s1 = inlined_call_operand.hbm [shape: f32[2,8,128], index: 1, kind: input, shape index: {}]   ;;  %s281_s2 = inlined_call_operand.hbm [shape: s32[8,128], index: 2, kind: input, shape index: {}]   ;;  %s282_s3 = inlined_call_operand.hbm [shape: f32[8,128], index: 3, kind: output, shape index: {}]  }
   0x1   :  { %9 = vsyncpa [#allocation4], 0 }
   0x2   :  { %10 = vsyncpa [#allocation9], 0 }
   0x3   :  { %11 = vsyncpa [#allocation5], 0  ;;  %s240_s12 = smov [#allocation3]   ;;  %s241_s15 = smov [#allocation7]  }
   0x4   :  { %19 = dma.hbm_to_smem %s279_s0, 16, %s240_s12, [#allocation6]  }
   0x5   :  { %s25_s16 = sshll.u32 %s241_s15, 4  ;;  %s26_s16 = int_to_ptr.vmem [resolvable:$true] %s25_s16 }
   0x6   :  { %s180_s17 = scalar_lea.vmem %s26_s16, 256  ;;  %p185_p1 = scmp.lt.s32.totalorder %s26_s16, %s26_s16 }
   0x7   :  { %p181_p0 = scmp.ne.s32.totalorder %s26_s16, %s180_s17  ;;  %p186_p2 = scmp.lt.s32.totalorder %s180_s17, %s180_s17 }
   0x9   :  { %p187_p3 = por %p186_p2, %p185_p1 }
   0xb   :  { %p188_p4 = pnand %p187_p3, %p181_p0 }
   0xd   :  { %191 = shalt.err (!%p188_p4)
}
   0xe   :  { %s242_s18 = smov 128   ;;  %s243_s19 = smov 8  }
   0xf   :  { %31 = dma.hbm_to_vmem [thread:$0]  %s280_s1, 256, %s26_s16, [#allocation4], %s242_s18, %s242_s18, %s243_s19  }
  0x10   :  { %s244_s22 = smov [#allocation8]  }
  0x11   :  { %s38_s23 = sshll.u32 %s244_s22, 4  ;;  %s39_s23 = int_to_ptr.vmem [resolvable:$true] %s38_s23 }
  0x12   :  { %s200_s0 = scalar_lea.vmem %s39_s23, 128  ;;  %p205_p6 = scmp.lt.s32.totalorder %s39_s23, %s39_s23 }
  0x13   :  { %p201_p5 = scmp.ne.s32.totalorder %s39_s23, %s200_s0  ;;  %p206_p7 = scmp.lt.s32.totalorder %s200_s0, %s200_s0 }
  0x15   :  { %p207_p8 = por %p206_p7, %p205_p6 }
  0x17   :  { %p208_p9 = pnand %p207_p8, %p201_p5 }
  0x19   :  { %211 = shalt.err (!%p208_p9)
}
  0x1a   :  { %41 = dma.hbm_to_vmem [thread:$0]  %s281_s2, 128, %s39_s23, [#allocation9]  }
  0x1b   :  { %232 = dma.done.wait [#allocation6], 16  }
  0x1c   :  { %233 = vsyncadd [#allocation6], 4294967280 }
  0x1d   :  { %234 = dma.done.wait [#allocation4], 256  }
  0x1e   :  { %235 = vsyncadd [#allocation4], 4294967040 }
  0x1f   :  { %236 = dma.done.wait [#allocation9], 128  }
  0x20   :  { %237 = vsyncadd [#allocation9], 4294967168 }
  0x21   :  { %51 = sfence }
  0x22   :  { %v58_v0 = vld [vmem:[#allocation7] sm:$0xff]  ;;  %v60_v1 = vld [vmem:[#allocation7 + $0x8] sm:$0xff]  ;;  %s70_s1 = sld [smem:[#allocation3]]  ;;  %v57_v9 = vld [vmem:[#allocation8] sm:$0xff]  ;;  %v99_v11 = vlaneseq  ;;  %v245_v12 = vmov 0.0   ;;  %s246_s26 = smov [#allocation10]  }
  0x23   :  { %v61_v2 = vmax.f32 %v58_v0, %v60_v1  ;;  %s147_s2 = sld [smem:[#allocation3 + $0x1]]  ;;  %vm65_vm0 = vcmp.eq.s32.totalorder %v57_v9, 0  ;;  %vm76_vm1 = vcmp.eq.s32.totalorder %v57_v9, 1  ;;  %s134_s27 = sshll.u32 %s246_s26, 4  ;;  %s135_s27 = int_to_ptr.vmem [resolvable:$true] %s134_s27 }
  0x24   :  { %v145_v13 = vsel %vm65_vm0, 1.0, %v245_v12  ;;  %v146_v14 = vsel %vm76_vm1, 1.0, %v245_v12  ;;  %v100_v19 = vshrl.u32 %v99_v11, 7  ;;  %v102_v22 = vand.u32 127, %v99_v11  ;;  %s212_s28 = scalar_lea.vmem %s135_s27, 128  ;;  %p217_p11 = scmp.lt.s32.totalorder %s135_s27, %s135_s27 }
  0x25   :  { %v62_v3 = vsub.f32 %v58_v0, %v61_v2  ;;  %v73_v4 = vsub.f32 %v60_v1, %v61_v2  ;;  %p213_p10 = scmp.ne.s32.totalorder %s135_s27, %s212_s28  ;;  %p218_p12 = scmp.lt.s32.totalorder %s212_s28, %s212_s28 }
  0x26   :  { %v103_v26 = vmul.u32 128, %v100_v19 }
  0x27   :  { %v63_v5 = vmul.f32 1.442695, %v62_v3  ;;  %v74_v6 = vmul.f32 1.442695, %v73_v4  ;;  %v68_v23 = vmul.f32 %v145_v13, %v62_v3  ;;  %v80_v24 = vmul.f32 %v146_v14, %v73_v4  ;;  %p219_p13 = por %p218_p12, %p217_p11 }
  0x28   :  { %v71_v15 = vstv %s70_s1  ;;  %v106_v33 = vadd.s32 %v103_v26, %v102_v22 }
  0x29   :  { %156 = vpow2.f32 %v63_v5  ;;  %v83_v16 = vstv %s147_s2  ;;  %v72_v20 = vmul.f32 %v145_v13, %v71_v15  ;;  %v85_v30 = vadd.f32 %v80_v24, %v68_v23  ;;  %p220_p0 = pnand %p219_p13, %p213_p10 }
  0x2a   :  { %158 = vpow2.f32 %v74_v6  ;;  %v84_v21 = vmul.f32 %v146_v14, %v83_v16  ;;  %vm107_vm2 = vcmp.lt.s32.totalorder %v106_v33, 8 }
  0x2b   :  { %v148_v39 = vsel %vm107_vm2, 1.0, %v245_v12 }
  0x2c   :  { %v87_v28 = vadd.f32 %v84_v21, %v72_v20 }
  0x2e   :  { %v95_v35 = vsub.f32 0.0, %v87_v28 }
  0x36   :  { %v157_v7 = vpop.eup %156 }
  0x37   :  { %v159_v8 = vpop.eup %158  ;;  %v69_v17 = vmul.f32 %v157_v7, %v145_v13 }
  0x38   :  { %v79_v10 = vadd.f32 %v159_v8, %v157_v7  ;;  %v81_v18 = vmul.f32 %v159_v8, %v146_v14 }
  0x3a   :  { %160 = vlog2.f32 %v79_v10  ;;  %v86_v25 = vadd.f32 %v81_v18, %v69_v17 }
  0x3b   :  { %162 = vrcp.f32 %v79_v10 }
  0x47   :  { %v161_v27 = vpop.eup %160 }
  0x48   :  { %v163_v29 = vpop.eup %162  ;;  %v89_v31 = vmul.f32 0.6931472, %v161_v27 }
  0x49   :  { %v92_v32 = vmul.f32 %v163_v29, %v86_v25 }
  0x4a   :  { %v90_v36 = vsub.f32 %v85_v30, %v89_v31 }
  0x4b   :  { %v93_v34 = vsub.f32 1.0, %v92_v32 }
  0x4d   :  { %v94_v37 = vmul.f32 %v93_v34, %v93_v34 }
  0x4f   :  { %v96_v38 = vmul.f32 %v95_v35, %v94_v37 }
  0x51   :  { %v97_v40 = vmul.f32 %v96_v38, %v90_v36 }
  0x53   :  { %v110_v41 = vmul.f32 %v148_v39, %v97_v40 }
  0x55   :  { %118 = vadd.xlane.f32.xlu0 %v110_v41 }
  0xde   :  { %v119_v42 = vpop.xlane.xlu0 %118 }
  0xdf   :  { %v120_v43 = vrot.slane %v119_v42, 4 }
  0xe1   :  { %v121_v44 = vadd.f32 %v120_v43, %v119_v42 }
  0xe3   :  { %v122_v45 = vrot.slane %v121_v44, 2 }
  0xe5   :  { %v123_v46 = vadd.f32 %v122_v45, %v121_v44 }
  0xe7   :  { %v124_v47 = vrot.slane %v123_v46, 1 }
  0xe9   :  { %v125_v48 = vadd.f32 %v124_v47, %v123_v46 }
  0xeb   :  { %v126_v49 = vmul.f32 0.125, %v125_v48 }
  0xed   :  { %127 = vst [vmem:[#allocation10] sm:$0xff] %v126_v49 }
  0xee   :  { %223 = shalt.err (!%p220_p0)
}
  0xef   :  { %137 = dma.vmem_to_hbm [thread:$0]  %s135_s27, 128, %s282_s3, [#allocation5]  }
  0xf0   :  { %238 = dma.done.wait [#allocation5], 128  }
  0xf1   :  { %239 = vsyncadd [#allocation5], 4294967168 }
  0xf2   :  { %141 = vsyncpa [#allocation4], 1 }
  0xf3   :  { %142 = vsyncpa [#allocation9], 1 }
  0xf4   :  { %143 = vsyncpa [#allocation5], 1 }
  0xf5   :  { %144 = vsyncpa [#allocation6], 1 }

</bundles_post_ra>
